<compile_context>
chip_gen: v6e
topology: v6e:2x2x1
jax: 0.10.0
libtpu: 0.0.40
codegen_flags: <defaults>
</compile_context>

<pallas_src>
import math

import jax
import jax.numpy as jnp
from jax.experimental import pallas as pl
from jax.experimental.pallas import tpu as pltpu


def make_positional_encoding(model_dim: int, max_len: int = 5000) -> jnp.ndarray:
    """Builds the sinusoidal PE table, identical to the torch __init__ (f32)."""
    assert model_dim % 2 == 0, "model_dim must be even (same limitation as torch code)"
    position = jnp.arange(0, max_len, dtype=jnp.float32)[:, None]          # (max_len, 1)
    div_term = jnp.exp(
        jnp.arange(0, model_dim, 2, dtype=jnp.float32)
        * -(math.log(10000.0) / model_dim)
    )                                                                       # (model_dim//2,)
    pe = jnp.zeros((max_len, model_dim), dtype=jnp.float32)
    pe = pe.at[:, 0::2].set(jnp.sin(position * div_term))
    pe = pe.at[:, 1::2].set(jnp.cos(position * div_term))
    return pe[None, :, :]                                                   # (1, max_len, model_dim)


def _pos_enc_kernel(x_ref, pe_ref, o_ref):
    # (B, TS, D) + (1, TS, D): batch-broadcast add on the VPU.  Add in f32 so a
    # bf16 x matches the PyTorch promotion against the f32 PE buffer, then cast
    # to the (promoted) output dtype.
    o_ref[...] = (
        x_ref[...].astype(jnp.float32) + pe_ref[...].astype(jnp.float32)
    ).astype(o_ref.dtype)


def _choose_seq_tile(batch: int, seq: int, model_dim: int,
                     x_itemsize: int, pe_itemsize: int,
                     vmem_budget_bytes: int = 8 * 1024 * 1024,
                     target_block_bytes: int = 2 * 1024 * 1024,
                     min_grid_steps: int = 8) -> int:
    """Sequence tile TS: multiple of the sublane granule, sized for VMEM/pipelining."""
    sublane = 8 * max(1, 4 // x_itemsize)           # 8 f32, 16 bf16, 32 int8/fp8
    d_pad = ((model_dim + 127) // 128) * 128         # lane padding of the last dim

    # Padded bytes per sequence row, per pipeline buffer: x + out (batch rows) + pe (1 row).
    bytes_per_row = d_pad * (2 * batch * x_itemsize + pe_itemsize)

    # (a) double-buffered residency must fit a v5e-safe budget (<= ~8 MiB of 16 MiB scoped).
    rows_vmem = vmem_budget_bytes // (2 * bytes_per_row)
    # (b) ~target_block_bytes per x block so the ~0.35 us per-step overhead is amortised.
    rows_tgt = target_block_bytes // max(1, batch * d_pad * x_itemsize)

    ts = max(sublane, (min(rows_vmem, rows_tgt) // sublane) * sublane)

    # (c) keep >= min_grid_steps grid steps when seq allows it (pipelining + v7x dual-TC).
    if seq // sublane >= min_grid_steps:
        ts = min(ts, max(sublane, ((seq // min_grid_steps) // sublane) * sublane))

    if ts >= seq:
        return seq                                   # single full-extent block
    return ts


def positional_encoding_forward(x: jnp.ndarray, pe: jnp.ndarray,
                                seq_tile: int | None = None) -> jnp.ndarray:
    """x: (B, S, D); pe: (1, max_len, D) f32 buffer. Returns x + pe[:, :S] (torch promotion)."""
    B, S, D = x.shape
    assert pe.ndim == 3 and pe.shape[0] == 1 and pe.shape[2] == D and pe.shape[1] >= S

    out_dtype = jnp.promote_types(x.dtype, pe.dtype)
    x_itemsize = jnp.dtype(x.dtype).itemsize
    pe_itemsize = jnp.dtype(pe.dtype).itemsize

    TS = seq_tile if seq_tile is not None else _choose_seq_tile(
        B, S, D, x_itemsize, pe_itemsize)
    TS = min(TS, S)
    assert TS == S or TS % 8 == 0, "seq tile must be a multiple of 8 or the full sequence"

    # Pass the whole PE table through untouched whenever block shapes allow it
    # (the grid only reads its first cdiv(S, TS) blocks).  Only slice to S rows
    # when a full-extent, non-multiple-of-8 block would otherwise violate the
    # (8, 128) block-shape rule against the longer max_len axis.
    pe_in = pe if (TS % 8 == 0 or pe.shape[1] == S) else pe[:, :S, :]

    grid = (pl.cdiv(S, TS),)

    out = pl.pallas_call(
        _pos_enc_kernel,
        out_shape=jax.ShapeDtypeStruct((B, S, D), out_dtype),
        grid=grid,
        in_specs=[
            pl.BlockSpec((B, TS, D), lambda s: (0, s, 0)),   # x tile
            pl.BlockSpec((1, TS, D), lambda s: (0, s, 0)),   # PE tile (batch-broadcast)
        ],
        out_specs=pl.BlockSpec((B, TS, D), lambda s: (0, s, 0)),
        compiler_params=pltpu.CompilerParams(
            dimension_semantics=("parallel",),
        ),
    )(x, pe_in)
    return out


if __name__ == "__main__":
    # Primary small test, matching the module layout (batch, seq, model_dim).
    B, S, D = 2, 8, 32
    MAX_LEN = 64
    x = jax.random.normal(jax.random.PRNGKey(0), (B, S, D), dtype=jnp.float32)
    pe = make_positional_encoding(D, MAX_LEN)

    out = jax.block_until_ready(positional_encoding_forward(x, pe))
    ref = x + pe[:, :S, :]
    assert out.shape == ref.shape and out.dtype == ref.dtype
    assert jnp.allclose(out, ref, atol=1e-6, rtol=1e-6)

    # Multi-step grid with a ragged last tile and S not a multiple of 8.
    B2, S2, D2 = 2, 20, 48
    x2 = jax.random.normal(jax.random.PRNGKey(1), (B2, S2, D2), dtype=jnp.float32)
    pe2 = make_positional_encoding(D2, 64)
    out2 = jax.block_until_ready(positional_encoding_forward(x2, pe2, seq_tile=8))
    ref2 = x2 + pe2[:, :S2, :]
    assert jnp.allclose(out2, ref2, atol=1e-6, rtol=1e-6)

    # bf16 activations: output promotes to f32 (matches torch x + f32 PE buffer).
    x3 = jax.random.normal(jax.random.PRNGKey(2), (B, S, D), dtype=jnp.bfloat16)
    out3 = jax.block_until_ready(positional_encoding_forward(x3, pe))
    ref3 = x3 + pe[:, :S, :]
    assert out3.dtype == ref3.dtype == jnp.float32
    assert jnp.allclose(out3, ref3, atol=1e-6, rtol=1e-6)

    print("KERNEL_OK")
</pallas_src>

<mosaic_0001>
module attributes {stable_mosaic.version = 11 : i64} {
  func.func @_pos_enc_kernel(%arg0: i32, %arg1: memref<2x8x32xf32, #tpu.memory_space<vmem>>, %arg2: memref<1x8x32xf32, #tpu.memory_space<vmem>>, %arg3: memref<2x8x32xf32, #tpu.memory_space<vmem>>) attributes {dimension_semantics = [#tpu.dimension_semantics<parallel>], iteration_bounds = array<i64: 1>, scalar_prefetch = 0 : i64, scratch_operands = 0 : i64, tpu.core_type = #tpu.core_type<tc>, window_params = [{transform_indices = @transform_0, window_bounds = array<i64: 2, 8, 32>}, {transform_indices = @transform_1, window_bounds = array<i64: 1, 8, 32>}, {transform_indices = @transform_2, window_bounds = array<i64: 2, 8, 32>}]} {
    %c0 = arith.constant 0 : index
    %c0_0 = arith.constant 0 : index
    %c0_1 = arith.constant 0 : index
    %0 = vector.load %arg1[%c0, %c0_0, %c0_1] : memref<2x8x32xf32, #tpu.memory_space<vmem>>, vector<2x8x32xf32>
    %c0_2 = arith.constant 0 : index
    %c0_3 = arith.constant 0 : index
    %c0_4 = arith.constant 0 : index
    %1 = vector.load %arg2[%c0_2, %c0_3, %c0_4] : memref<1x8x32xf32, #tpu.memory_space<vmem>>, vector<1x8x32xf32>
    %2 = vector.broadcast %1 : vector<1x8x32xf32> to vector<2x8x32xf32>
    %3 = arith.addf %0, %2 : vector<2x8x32xf32>
    %c0_5 = arith.constant 0 : index
    %c0_6 = arith.constant 0 : index
    %c0_7 = arith.constant 0 : index
    %4 = vector.load %arg3[%c0_5, %c0_6, %c0_7] : memref<2x8x32xf32, #tpu.memory_space<vmem>>, vector<2x8x32xf32>
    tpu.vector_store %arg3[%c0_5, %c0_6, %c0_7], %3 {strides = array<i32>} : memref<2x8x32xf32, #tpu.memory_space<vmem>>, vector<2x8x32xf32>,
    return
  }
  func.func @transform_0(%arg0: i32) -> (i32, i32, i32) {
    %c0_i32 = arith.constant 0 : i32
    %c0_i32_0 = arith.constant 0 : i32
    %c0_i32_1 = arith.constant 0 : i32
    return %c0_i32, %arg0, %c0_i32_0 : i32, i32, i32
  }
  func.func @transform_1(%arg0: i32) -> (i32, i32, i32) {
    %c0_i32 = arith.constant 0 : i32
    %c0_i32_0 = arith.constant 0 : i32
    %c0_i32_1 = arith.constant 0 : i32
    return %c0_i32, %arg0, %c0_i32_0 : i32, i32, i32
  }
  func.func @transform_2(%arg0: i32) -> (i32, i32, i32) {
    %c0_i32 = arith.constant 0 : i32
    %c0_i32_0 = arith.constant 0 : i32
    %c0_i32_1 = arith.constant 0 : i32
    return %c0_i32, %arg0, %c0_i32_0 : i32, i32, i32
  }
}

</mosaic_0001>

<bundles_post_ra>
// kernel: tpu_custom_call.1
= control target key start
LH: loop header
LB: loop body
LE: loop exit
PB: predicated region body
PF: predicated region fallthrough
CT: control target
= control target key end

     0   :  { %vm17_vm0 = vcmask 261120   ;;  %s91_s0 = inlined_call_operand.vmem [shape: f32[2,8,32], index: 0, kind: input, shape index: {}]   ;;  %s92_s1 = inlined_call_operand.vmem [shape: f32[1,64,32], index: 1, kind: input, shape index: {}]   ;;  %s93_s2 = inlined_call_operand.hbm [shape: f32[2,8,32], index: 2, kind: output, shape index: {}]  }
   0x1   :  { %v12_v0 = vld [vmem:[%s91_s0] sm:$0xff]  ;;  %v13_v2 = vld [vmem:[%s91_s0 + $0x8] sm:$0xff] }
   0x2   :  { %v14_v1 = vld [vmem:[%s92_s1] sm:$0xff] }
   0x3   :  { %v15_v3 = vadd.f32 %v14_v1, %v12_v0  ;;  %v16_v4 = vadd.f32 %v14_v1, %v13_v2 }
   0x4   :  { %7 = vsyncpa [#allocation3], 0  ;;  %s61_s15 = smov [#allocation2]  }
   0x5   :  { %s25_s16 = sshll.u32 %s61_s15, 4  ;;  %18 = vst.msk [vmem:[#allocation2] sm:$0xff] %vm17_vm0, %v15_v3  ;;  %19 = vst.msk [vmem:[#allocation2 + $0x8] sm:$0xff] %vm17_vm0, %v16_v4  ;;  %s26_s16 = int_to_ptr.vmem [resolvable:$true] %s25_s16 }
   0x6   :  { %s39_s17 = scalar_lea.vmem %s26_s16, 256  ;;  %p44_p1 = scmp.lt.s32.totalorder %s26_s16, %s26_s16 }
   0x7   :  { %p40_p0 = scmp.ne.s32.totalorder %s26_s16, %s39_s17  ;;  %p45_p2 = scmp.lt.s32.totalorder %s39_s17, %s39_s17 }
   0x9   :  { %p46_p3 = por %p45_p2, %p44_p1 }
   0xb   :  { %p47_p4 = pnand %p46_p3, %p40_p0 }
   0xd   :  { %50 = shalt.err (!%p47_p4)
}
   0xe   :  { %s62_s1 = smov 128   ;;  %s63_s18 = smov 8  }
   0xf   :  { %31 = dma.vmem_to_hbm [thread:$0]  %s26_s16, 256, %s93_s2, [#allocation3], %s62_s1, %s62_s1, %s63_s18  }
  0x10   :  { %59 = dma.done.wait [#allocation3], 256  }
  0x11   :  { %60 = vsyncadd [#allocation3], 4294967040 }
  0x12   :  { %35 = vsyncpa [#allocation3], 1 }

</bundles_post_ra>
